<compile_context>
chip_gen: v7x
topology: tpu7x:2x2x1
jax: 0.10.0
libtpu: 0.0.40
codegen_flags: <defaults>
</compile_context>

<pallas_src>
import functools

import jax
import jax.numpy as jnp
from jax.experimental import pallas as pl
from jax.experimental.pallas import tpu as pltpu


def _round_up(x, m):
    return (x + m - 1) // m * m


def _default_act_dtype():
    """bf16 activations on v6e/v7x (bf16 EUP/VPU); f32 on v5e and older."""
    try:
        kind = jax.devices()[0].device_kind.lower()
    except Exception:
        return jnp.float32
    if any(v in kind for v in ("v2", "v3", "v4", "v5")):
        return jnp.float32
    return jnp.bfloat16


def gated_attn_kernel(x_ref, w_ab_ref, b_ab_ref, wc_ref, bc_ref, out_ref, *,
                      d_pad, matmul_dtype, act_dtype):
    """One row-tile of fused gated attention scoring.

    x_ref    : (tile_n, L)      original x dtype (cast to matmul_dtype in VMEM)
    w_ab_ref : (L, 2*d_pad)     fused [Wa | Wb], matmul dtype
    b_ab_ref : (1, 2*d_pad)     fused [ba | bb], f32
    wc_ref   : (d_pad, c_pad)   zero-padded Wc, matmul dtype
    bc_ref   : (1, c_pad)       zero-padded bc, f32
    out_ref  : (tile_n, c_pad)  lane-dense output slab
    """
    # In-VMEM cast (VALU, hidden under the MXU) instead of a host astype pass.
    x = x_ref[...].astype(matmul_dtype)
    # One wide MXU matmul for both branches; f32 accumulation + f32 bias add.
    ab = (jnp.dot(x, w_ab_ref[...], preferred_element_type=jnp.float32)
          + b_ab_ref[...]).astype(act_dtype)
    # d_pad is a multiple of 128 -> lane-aligned column slices.
    a = jnp.tanh(ab[:, :d_pad])
    # sigmoid(z) = 0.5 * tanh(0.5*z) + 0.5 -> exactly one EUP op per element.
    b = 0.5 * jnp.tanh(0.5 * ab[:, d_pad:]) + 0.5
    gated = (a * b).astype(wc_ref.dtype)
    # Final projection into the 128-lane-padded output slab. Stores are
    # unmasked 128-lane writes (only the ragged final row block is row-masked).
    out_ref[...] = (
        jnp.dot(gated, wc_ref[...], preferred_element_type=jnp.float32)
        + bc_ref[...]).astype(out_ref.dtype)


def attn_net_gated_forward(x, params, *, tile_n=1024,
                           matmul_dtype=jnp.bfloat16,
                           act_dtype=None,
                           out_dtype=jnp.float32,
                           vmem_limit_bytes=48 * 1024 * 1024):
    """Pallas implementation of Attn_Net_Gated.forward (dropout=False path).

    Args:
      x: (N, L) float array (any float dtype; cast to matmul_dtype in-kernel).
      params: dict with Wa (L,D), ba (1,D), Wb (L,D), bb (1,D), Wc (D,C), bc (1,C).
      tile_n: target row-tile size (capped so the row grid has >= 2 steps).
      matmul_dtype: dtype fed to the MXU (bf16 recommended; f32 for exactness).
      act_dtype: dtype for tanh/sigmoid/gating (None -> bf16 on v6e/v7x, f32 on v5e).
      out_dtype: dtype of the attention-logit slab (bf16 halves writeback).
      vmem_limit_bytes: explicit scoped-VMEM limit (v5e default is only 16 MiB;
        keep <= ~48 MiB so the same setting is legal on v7x's 64 MiB/TC).
    Returns:
      (A, x): A is (N, C) attention logits; x is passed through unchanged.
    """
    N, L = x.shape
    Wa, ba = params["Wa"], params["ba"]
    Wb, bb = params["Wb"], params["bb"]
    Wc, bc = params["Wc"], params["bc"]
    D = Wa.shape[1]
    C = Wc.shape[1]
    if act_dtype is None:
        act_dtype = _default_act_dtype()

    # --- lane-aligned padding of the (tiny) weights, once, on the host -------
    d_pad = _round_up(D, 128)
    c_pad = _round_up(C, 128)

    w_ab = jnp.zeros((L, 2 * d_pad), matmul_dtype)
    w_ab = w_ab.at[:, :D].set(Wa.astype(matmul_dtype))
    w_ab = w_ab.at[:, d_pad:d_pad + D].set(Wb.astype(matmul_dtype))

    b_ab = jnp.zeros((1, 2 * d_pad), jnp.float32)
    b_ab = b_ab.at[:, :D].set(ba.reshape(1, D).astype(jnp.float32))
    b_ab = b_ab.at[:, d_pad:d_pad + D].set(bb.reshape(1, D).astype(jnp.float32))

    wc_p = jnp.zeros((d_pad, c_pad), matmul_dtype)
    wc_p = wc_p.at[:D, :C].set(Wc.astype(matmul_dtype))
    bc_p = jnp.zeros((1, c_pad), jnp.float32)
    bc_p = bc_p.at[:, :C].set(bc.reshape(1, C).astype(jnp.float32))

    # --- row tiling (no padding / no copies of x) -----------------------------
    # Sublane multiple for the stored x dtype (f32 -> 8, bf16 -> 16, int8 -> 32).
    sub = {4: 8, 2: 16, 1: 32}.get(jnp.dtype(x.dtype).itemsize, 8)
    # Cap the tile so the row grid has >= 2 steps whenever N allows it: keeps
    # both v7x TensorCores busy on the "parallel" row axis.
    half_rows = _round_up(pl.cdiv(N, 2), sub)
    tile_n_eff = max(sub, min(_round_up(tile_n, sub), half_rows))
    grid = (pl.cdiv(N, tile_n_eff),)
    # NOTE: x is NOT padded. The ragged final block reads unspecified rows; they
    # only feed output rows that Pallas masks off on store. Do not add any
    # cross-row reduction (e.g. in-kernel softmax over N) without masking.
    # L is left unpadded on purpose: the x block's last dim equals the full
    # array dim (always legal); typical L=512/1024 is already 128-aligned.

    kernel = functools.partial(gated_attn_kernel, d_pad=d_pad,
                               matmul_dtype=matmul_dtype, act_dtype=act_dtype)

    def call(constant_single_buffer):
        if constant_single_buffer:
            # Constant-index operands are fetched once -> one VMEM buffer each.
            def wspec(shape):
                return pl.BlockSpec(shape, lambda i: (0, 0),
                                    pipeline_mode=pl.Buffered(buffer_count=1))
        else:
            def wspec(shape):
                return pl.BlockSpec(shape, lambda i: (0, 0))
        return pl.pallas_call(
            kernel,
            out_shape=jax.ShapeDtypeStruct((N, c_pad), out_dtype),
            grid_spec=pltpu.PrefetchScalarGridSpec(
                num_scalar_prefetch=0,
                grid=grid,
                in_specs=[
                    pl.BlockSpec((tile_n_eff, L), lambda i: (i, 0)),   # x tile
                    wspec((L, 2 * d_pad)),                             # [Wa|Wb]
                    wspec((1, 2 * d_pad)),                             # [ba|bb]
                    wspec((d_pad, c_pad)),                             # Wc (padded)
                    wspec((1, c_pad)),                                 # bc (padded)
                ],
                out_specs=pl.BlockSpec((tile_n_eff, c_pad), lambda i: (i, 0)),
            ),
            compiler_params=pltpu.CompilerParams(
                dimension_semantics=("parallel",),   # v7x: shard rows over 2 TCs
                vmem_limit_bytes=vmem_limit_bytes),
        )(x, w_ab, b_ab, wc_p, bc_p)

    try:
        out = call(constant_single_buffer=True)
    except Exception:
        # Fallback for jax versions without BlockSpec pipeline_mode / Buffered.
        out = call(constant_single_buffer=False)

    # Drop the lane padding. In a fused pipeline, keep the padded slab (or fuse
    # the downstream softmax over N into this kernel) to skip this extra copy.
    A = out[:, :C]
    return A, x               # module returns (A, x) with x untouched


def init_params(key, L, D, C):
    """PyTorch-Linear-style uniform(-1/sqrt(fan_in), +1/sqrt(fan_in)) init."""
    ks = jax.random.split(key, 6)
    sL = 1.0 / jnp.sqrt(L)
    sD = 1.0 / jnp.sqrt(D)
    return {
        "Wa": jax.random.uniform(ks[0], (L, D), jnp.float32, -sL, sL),
        "ba": jax.random.uniform(ks[1], (1, D), jnp.float32, -sL, sL),
        "Wb": jax.random.uniform(ks[2], (L, D), jnp.float32, -sL, sL),
        "bb": jax.random.uniform(ks[3], (1, D), jnp.float32, -sL, sL),
        "Wc": jax.random.uniform(ks[4], (D, C), jnp.float32, -sD, sD),
        "bc": jax.random.uniform(ks[5], (1, C), jnp.float32, -sD, sD),
    }
    # TODO(synk): dropout branch (dropout=True) not implemented — this kernel
    # matches the default / inference path (dropout=False).


if __name__ == "__main__":
    key = jax.random.PRNGKey(0)
    k_x, k_p = jax.random.split(key)

    # Small shapes consistent with the module (N instances of L-dim features).
    # N=24 deliberately not a multiple of the row tile to exercise the ragged
    # final block (no host-side padding of x).
    N, L, D, C = 24, 32, 16, 1
    x = jax.random.normal(k_x, (N, L), dtype=jnp.float32)
    params = init_params(k_p, L, D, C)

    # Pure-JAX f32 reference.
    a_ref = jnp.tanh(x @ params["Wa"] + params["ba"])
    b_ref = jax.nn.sigmoid(x @ params["Wb"] + params["bb"])
    A_ref = (a_ref * b_ref) @ params["Wc"] + params["bc"]

    # Default fast path: bf16 MXU inputs + f32 accumulation, generation-gated
    # activation dtype.  bf16 quantization -> ~1e-2-scale absolute error.
    A, x_out = attn_net_gated_forward(x, params)
    A = jax.block_until_ready(A)
    assert A.shape == (N, C)
    assert jnp.allclose(A, A_ref, atol=5e-2, rtol=0.0), "bf16 path mismatch"
    assert x_out is x

    # Switchable full-f32 path for callers that compare tightly against f32.
    A32, _ = attn_net_gated_forward(x, params, matmul_dtype=jnp.float32,
                                    act_dtype=jnp.float32)
    A32 = jax.block_until_ready(A32)
    assert A32.shape == (N, C)
    assert jnp.allclose(A32, A_ref, atol=5e-3, rtol=0.0), "f32 path mismatch"

    print("KERNEL_OK")
</pallas_src>

<mosaic_0001>
module attributes {stable_mosaic.version = 11 : i64} {
  func.func @gated_attn_kernel(%arg0: i32, %arg1: memref<16x32xf32, #tpu.memory_space<vmem>>, %arg2: memref<32x256xbf16, #tpu.memory_space<vmem>>, %arg3: memref<1x256xf32, #tpu.memory_space<vmem>>, %arg4: memref<128x128xbf16, #tpu.memory_space<vmem>>, %arg5: memref<1x128xf32, #tpu.memory_space<vmem>>, %arg6: memref<16x128xf32, #tpu.memory_space<vmem>>) attributes {dimension_semantics = [#tpu.dimension_semantics<parallel>], iteration_bounds = array<i64: 2>, scalar_prefetch = 0 : i64, scratch_operands = 0 : i64, tpu.core_type = #tpu.core_type<tc>, window_params = [{transform_indices = @transform_0, window_bounds = array<i64: 16, 32>}, {pipeline_mode = #tpu.pipeline_mode<synchronous>, transform_indices = @transform_1, window_bounds = array<i64: 32, 256>}, {pipeline_mode = #tpu.pipeline_mode<synchronous>, transform_indices = @transform_2, window_bounds = array<i64: 1, 256>}, {pipeline_mode = #tpu.pipeline_mode<synchronous>, transform_indices = @transform_3, window_bounds = array<i64: 128, 128>}, {pipeline_mode = #tpu.pipeline_mode<synchronous>, transform_indices = @transform_4, window_bounds = array<i64: 1, 128>}, {transform_indices = @transform_5, window_bounds = array<i64: 16, 128>}]} {
    %c0 = arith.constant 0 : index
    %c0_0 = arith.constant 0 : index
    %0 = vector.load %arg1[%c0, %c0_0] : memref<16x32xf32, #tpu.memory_space<vmem>>, vector<16x32xf32>
    %1 = arith.truncf %0 : vector<16x32xf32> to vector<16x32xbf16>
    %c0_1 = arith.constant 0 : index
    %c0_2 = arith.constant 0 : index
    %2 = vector.load %arg2[%c0_1, %c0_2] : memref<32x256xbf16, #tpu.memory_space<vmem>>, vector<32x256xbf16>
    %cst = arith.constant dense<0.000000e+00> : vector<16x256xf32>
    %3 = tpu.matmul %1, %2, %cst {dimension_numbers = #tpu.dot_dimension_numbers<[1], [0], [0], [1], [0, 0, 1, 1], [], []>} : vector<16x32xbf16>, vector<32x256xbf16>, vector<16x256xf32> -> vector<16x256xf32>
    %c0_3 = arith.constant 0 : index
    %c0_4 = arith.constant 0 : index
    %4 = vector.load %arg3[%c0_3, %c0_4] : memref<1x256xf32, #tpu.memory_space<vmem>>, vector<1x256xf32>
    %5 = vector.broadcast %4 : vector<1x256xf32> to vector<16x256xf32>
    %6 = arith.addf %3, %5 : vector<16x256xf32>
    %7 = arith.truncf %6 : vector<16x256xf32> to vector<16x256xbf16>
    %8 = vector.extract_strided_slice %7 {offsets = [0, 0], sizes = [16, 128], strides = [1, 1]} : vector<16x256xbf16> to vector<16x128xbf16>
    %9 = math.tanh %8 : vector<16x128xbf16>
    %10 = vector.extract_strided_slice %7 {offsets = [0, 128], sizes = [16, 128], strides = [1, 1]} : vector<16x256xbf16> to vector<16x128xbf16>
    %cst_5 = arith.constant 5.000000e-01 : bf16
    %11 = vector.broadcast %cst_5 : bf16 to vector<16x128xbf16>
    %12 = arith.mulf %11, %10 : vector<16x128xbf16>
    %13 = math.tanh %12 : vector<16x128xbf16>
    %cst_6 = arith.constant 5.000000e-01 : bf16
    %14 = vector.broadcast %cst_6 : bf16 to vector<16x128xbf16>
    %15 = arith.mulf %14, %13 : vector<16x128xbf16>
    %cst_7 = arith.constant 5.000000e-01 : bf16
    %16 = vector.broadcast %cst_7 : bf16 to vector<16x128xbf16>
    %17 = arith.addf %15, %16 : vector<16x128xbf16>
    %18 = arith.mulf %9, %17 : vector<16x128xbf16>
    %c0_8 = arith.constant 0 : index
    %c0_9 = arith.constant 0 : index
    %19 = vector.load %arg4[%c0_8, %c0_9] : memref<128x128xbf16, #tpu.memory_space<vmem>>, vector<128x128xbf16>
    %cst_10 = arith.constant dense<0.000000e+00> : vector<16x128xf32>
    %20 = tpu.matmul %18, %19, %cst_10 {dimension_numbers = #tpu.dot_dimension_numbers<[1], [0], [0], [1], [0, 0, 1, 1], [], []>} : vector<16x128xbf16>, vector<128x128xbf16>, vector<16x128xf32> -> vector<16x128xf32>
    %c0_11 = arith.constant 0 : index
    %c0_12 = arith.constant 0 : index
    %21 = vector.load %arg5[%c0_11, %c0_12] : memref<1x128xf32, #tpu.memory_space<vmem>>, vector<1x128xf32>
    %22 = vector.broadcast %21 : vector<1x128xf32> to vector<16x128xf32>
    %23 = arith.addf %20, %22 : vector<16x128xf32>
    %c0_13 = arith.constant 0 : index
    %c0_14 = arith.constant 0 : index
    %24 = vector.load %arg6[%c0_13, %c0_14] : memref<16x128xf32, #tpu.memory_space<vmem>>, vector<16x128xf32>
    tpu.vector_store %arg6[%c0_13, %c0_14], %23 {strides = array<i32>} : memref<16x128xf32, #tpu.memory_space<vmem>>, vector<16x128xf32>,
    return
  }
  func.func @transform_0(%arg0: i32) -> (i32, i32) {
    %c0_i32 = arith.constant 0 : i32
    %c0_i32_0 = arith.constant 0 : i32
    return %arg0, %c0_i32 : i32, i32
  }
  func.func @transform_1(%arg0: i32) -> (i32, i32) {
    %c0_i32 = arith.constant 0 : i32
    %c0_i32_0 = arith.constant 0 : i32
    %c0_i32_1 = arith.constant 0 : i32
    return %c0_i32, %c0_i32_0 : i32, i32
  }
  func.func @transform_2(%arg0: i32) -> (i32, i32) {
    %c0_i32 = arith.constant 0 : i32
    %c0_i32_0 = arith.constant 0 : i32
    %c0_i32_1 = arith.constant 0 : i32
    return %c0_i32, %c0_i32_0 : i32, i32
  }
  func.func @transform_3(%arg0: i32) -> (i32, i32) {
    %c0_i32 = arith.constant 0 : i32
    %c0_i32_0 = arith.constant 0 : i32
    %c0_i32_1 = arith.constant 0 : i32
    return %c0_i32, %c0_i32_0 : i32, i32
  }
  func.func @transform_4(%arg0: i32) -> (i32, i32) {
    %c0_i32 = arith.constant 0 : i32
    %c0_i32_0 = arith.constant 0 : i32
    %c0_i32_1 = arith.constant 0 : i32
    return %c0_i32, %c0_i32_0 : i32, i32
  }
  func.func @transform_5(%arg0: i32) -> (i32, i32) {
    %c0_i32 = arith.constant 0 : i32
    %c0_i32_0 = arith.constant 0 : i32
    return %arg0, %c0_i32 : i32, i32
  }
}

module attributes {stable_mosaic.version = 11 : i64} {
  func.func @gated_attn_kernel(%arg0: i32, %arg1: memref<16x32xf32, #tpu.memory_space<vmem>>, %arg2: memref<32x256xbf16, #tpu.memory_space<vmem>>, %arg3: memref<1x256xf32, #tpu.memory_space<vmem>>, %arg4: memref<128x128xbf16, #tpu.memory_space<vmem>>, %arg5: memref<1x128xf32, #tpu.memory_space<vmem>>, %arg6: memref<16x128xf32, #tpu.memory_space<vmem>>) attributes {dimension_semantics = [#tpu.dimension_semantics<parallel>], iteration_bounds = array<i64: 2>, scalar_prefetch = 0 : i64, scratch_operands = 0 : i64, tpu.core_type = #tpu.core_type<tc>, window_params = [{transform_indices = @transform_0, window_bounds = array<i64: 16, 32>}, {pipeline_mode = #tpu.pipeline_mode<synchronous>, transform_indices = @transform_1, window_bounds = array<i64: 32, 256>}, {pipeline_mode = #tpu.pipeline_mode<synchronous>, transform_indices = @transform_2, window_bounds = array<i64: 1, 256>}, {pipeline_mode = #tpu.pipeline_mode<synchronous>, transform_indices = @transform_3, window_bounds = array<i64: 128, 128>}, {pipeline_mode = #tpu.pipeline_mode<synchronous>, transform_indices = @transform_4, window_bounds = array<i64: 1, 128>}, {transform_indices = @transform_5, window_bounds = array<i64: 16, 128>}]} {
    %c0 = arith.constant 0 : index
    %c0_0 = arith.constant 0 : index
    %0 = vector.load %arg1[%c0, %c0_0] : memref<16x32xf32, #tpu.memory_space<vmem>>, vector<16x32xf32>
    %1 = arith.truncf %0 : vector<16x32xf32> to vector<16x32xbf16>
    %c0_1 = arith.constant 0 : index
    %c0_2 = arith.constant 0 : index
    %2 = vector.load %arg2[%c0_1, %c0_2] : memref<32x256xbf16, #tpu.memory_space<vmem>>, vector<32x256xbf16>
    %cst = arith.constant dense<0.000000e+00> : vector<16x256xf32>
    %3 = tpu.matmul %1, %2, %cst {dimension_numbers = #tpu.dot_dimension_numbers<[1], [0], [0], [1], [0, 0, 1, 1], [], []>} : vector<16x32xbf16>, vector<32x256xbf16>, vector<16x256xf32> -> vector<16x256xf32>
    %c0_3 = arith.constant 0 : index
    %c0_4 = arith.constant 0 : index
    %4 = vector.load %arg3[%c0_3, %c0_4] : memref<1x256xf32, #tpu.memory_space<vmem>>, vector<1x256xf32>
    %5 = vector.broadcast %4 : vector<1x256xf32> to vector<16x256xf32>
    %6 = arith.addf %3, %5 : vector<16x256xf32>
    %7 = arith.truncf %6 : vector<16x256xf32> to vector<16x256xbf16>
    %8 = vector.extract_strided_slice %7 {offsets = [0, 0], sizes = [16, 128], strides = [1, 1]} : vector<16x256xbf16> to vector<16x128xbf16>
    %9 = math.tanh %8 : vector<16x128xbf16>
    %10 = vector.extract_strided_slice %7 {offsets = [0, 128], sizes = [16, 128], strides = [1, 1]} : vector<16x256xbf16> to vector<16x128xbf16>
    %cst_5 = arith.constant 5.000000e-01 : bf16
    %11 = vector.broadcast %cst_5 : bf16 to vector<16x128xbf16>
    %12 = arith.mulf %11, %10 : vector<16x128xbf16>
    %13 = math.tanh %12 : vector<16x128xbf16>
    %cst_6 = arith.constant 5.000000e-01 : bf16
    %14 = vector.broadcast %cst_6 : bf16 to vector<16x128xbf16>
    %15 = arith.mulf %14, %13 : vector<16x128xbf16>
    %cst_7 = arith.constant 5.000000e-01 : bf16
    %16 = vector.broadcast %cst_7 : bf16 to vector<16x128xbf16>
    %17 = arith.addf %15, %16 : vector<16x128xbf16>
    %18 = arith.mulf %9, %17 : vector<16x128xbf16>
    %c0_8 = arith.constant 0 : index
    %c0_9 = arith.constant 0 : index
    %19 = vector.load %arg4[%c0_8, %c0_9] : memref<128x128xbf16, #tpu.memory_space<vmem>>, vector<128x128xbf16>
    %cst_10 = arith.constant dense<0.000000e+00> : vector<16x128xf32>
    %20 = tpu.matmul %18, %19, %cst_10 {dimension_numbers = #tpu.dot_dimension_numbers<[1], [0], [0], [1], [0, 0, 1, 1], [], []>} : vector<16x128xbf16>, vector<128x128xbf16>, vector<16x128xf32> -> vector<16x128xf32>
    %c0_11 = arith.constant 0 : index
    %c0_12 = arith.constant 0 : index
    %21 = vector.load %arg5[%c0_11, %c0_12] : memref<1x128xf32, #tpu.memory_space<vmem>>, vector<1x128xf32>
    %22 = vector.broadcast %21 : vector<1x128xf32> to vector<16x128xf32>
    %23 = arith.addf %20, %22 : vector<16x128xf32>
    %c0_13 = arith.constant 0 : index
    %c0_14 = arith.constant 0 : index
    %24 = vector.load %arg6[%c0_13, %c0_14] : memref<16x128xf32, #tpu.memory_space<vmem>>, vector<16x128xf32>
    tpu.vector_store %arg6[%c0_13, %c0_14], %23 {strides = array<i32>} : memref<16x128xf32, #tpu.memory_space<vmem>>, vector<16x128xf32>,
    return
  }
  func.func @transform_0(%arg0: i32) -> (i32, i32) {
    %c0_i32 = arith.constant 0 : i32
    %c0_i32_0 = arith.constant 0 : i32
    return %arg0, %c0_i32 : i32, i32
  }
  func.func @transform_1(%arg0: i32) -> (i32, i32) {
    %c0_i32 = arith.constant 0 : i32
    %c0_i32_0 = arith.constant 0 : i32
    %c0_i32_1 = arith.constant 0 : i32
    return %c0_i32, %c0_i32_0 : i32, i32
  }
  func.func @transform_2(%arg0: i32) -> (i32, i32) {
    %c0_i32 = arith.constant 0 : i32
    %c0_i32_0 = arith.constant 0 : i32
    %c0_i32_1 = arith.constant 0 : i32
    return %c0_i32, %c0_i32_0 : i32, i32
  }
  func.func @transform_3(%arg0: i32) -> (i32, i32) {
    %c0_i32 = arith.constant 0 : i32
    %c0_i32_0 = arith.constant 0 : i32
    %c0_i32_1 = arith.constant 0 : i32
    return %c0_i32, %c0_i32_0 : i32, i32
  }
  func.func @transform_4(%arg0: i32) -> (i32, i32) {
    %c0_i32 = arith.constant 0 : i32
    %c0_i32_0 = arith.constant 0 : i32
    %c0_i32_1 = arith.constant 0 : i32
    return %c0_i32, %c0_i32_0 : i32, i32
  }
  func.func @transform_5(%arg0: i32) -> (i32, i32) {
    %c0_i32 = arith.constant 0 : i32
    %c0_i32_0 = arith.constant 0 : i32
    return %arg0, %c0_i32 : i32, i32
  }
}

</mosaic_0001>

<bundles_post_ra>
// kernel: tpu_custom_call.1
= control target key start
LH: loop header
LB: loop body
LE: loop exit
PB: predicated region body
PF: predicated region fallthrough
CT: control target
= control target key end

     0   :  { %10 = vsyncpa [#allocation3], 0  ;;  %s1226_s0 = inlined_call_operand.hbm [shape: f32[24,32], index: 0, kind: input, shape index: {}]   ;;  %s1227_s1 = inlined_call_operand.hbm [shape: bf16[32,256], index: 1, kind: input, shape index: {}]   ;;  %s1228_s2 = inlined_call_operand.vmem [shape: f32[1,256], index: 2, kind: input, shape index: {}]   ;;  %s1229_s3 = inlined_call_operand.hbm [shape: bf16[128,128], index: 3, kind: input, shape index: {}]   ;;  %s1230_s4 = inlined_call_operand.vmem [shape: f32[1,128], index: 4, kind: input, shape index: {}]   ;;  %s1231_s5 = inlined_call_operand.hbm [shape: f32[24,128], index: 5, kind: output, shape index: {}]  }
   0x1   :  { %12 = vsyncpa [#allocation3 + $0x1], 0 }
   0x2   :  { %13 = vsyncpa [#allocation6], 0 }
   0x3   :  { %14 = vsyncpa [#allocation4], 0 }
   0x4   :  { %16 = vsyncpa [#allocation4 + $0x1], 0  ;;  %s971_s18 = smov 0   ;;  %s973_s19 = smov 0  }
   0x5   :  { %s975_s20 = smov 0   ;;  %s977_s21 = smov 0  }
   0x6 LB: > { %s992_s22 = sadd.s32 4294967295, %s924_s21   ;;  %s610_s23 = sadd.s32 4294967294, %s924_s21   ;;  %s924_s21 = sphi %s977_s21, %s1253_s21   ;;  %s920_s20 = sphi %s975_s20, %s1252_s20   ;;  %s916_s19 = sphi %s973_s19, %s1251_s19   ;;  %s912_s18 = sphi %s971_s18, %s1250_s18  }
   0x7   : > { %s996_s24 = sadd.s32 1, %s924_s21   ;;  %s29_s25 = sadd.s32 1, %s920_s20 }
   0x8   : > { %s26_s26 = ssub.s32 %s924_s21, %s996_s24  ;;  %p36_p0 = scmp.ne.s32.totalorder %s920_s20, %s916_s19 }
   0x9   : > { %p27_p1 = scmp.eq.s32.totalorder %s26_s26, 0  ;;  %p37_p2 = scmp.eq.s32.totalorder %s924_s21, 0 }
   0xa   : > { %p42_p3 = scmp.ne.s32.totalorder %s916_s19, %s912_s18  ;;  %p1232_p4 = scmp.eq.s32.totalorder %s992_s22, 0 }
   0xb   : > { %s1008_s27 = scalar_select %p27_p1, %s920_s20, %s29_s25  }
   0xc   : > { %p1010_p5 = por %p37_p2, %p36_p0  ;;  %p1016_p6 = por %p1232_p4, %p42_p3 }
   0xd   : > { %1235 = sst [smem:[#allocation12_spill]] %s1008_s27  ;;  %p150_p7 = scmp.eq.s32.totalorder %s992_s22, 1 }
   0xe   : > { %s1236_s28 = scalar_select %p1010_p5, 1, 0 }
   0xf   : > { %s1237_s29 = scalar_select %p1016_p6, 1, 0 }
  0x10   : > { %p156_p8 = scmp.eq.s32.totalorder %s610_s23, 1  ;;  %p611_p9 = scmp.ge.s32.totalorder %s924_s21, 1 }
  0x11   : > { %p163_p10 = scmp.lt.s32.totalorder %s924_s21, 3  ;;  %p1023_p11 = por %p150_p7, %p36_p0 }
  0x12   : > { %p1027_p12 = por %p156_p8, %p42_p3  ;;  %s926_s8 = smov [#allocation5]  }
  0x13   : > { %s1238_s30 = scalar_select %p1023_p11, 1, 0 }
  0x14   : > { %s1239_s6 = scalar_select %p1027_p12, 1, 0 }
  0x15   : > { %p1031_p13 = pnand %p611_p9, %p163_p10  ;;  %s175_s9 = sshll.u32 %s926_s8, 4  ;;  %s176_s9 = int_to_ptr.vmem [resolvable:$true] %s175_s9 }
  0x16   : > { %s927_s11 = smov [#allocation7]   ;;  %s770_s15 = scalar_lea.hbm %s1227_s1, 512 }
  0x17   : > { %s1240_s7 = scalar_select %p1031_p13, 1, 0 }
  0x18   : > { %p691_p1 = pneg %p1031_p13  ;;  %s191_s12 = sshll.u32 %s927_s11, 4  ;;  %s1043_s12 = int_to_ptr.vmem [resolvable:$true] %s191_s12 }
  0x19   : > { %p771_p0 = scmp.ne.s32.totalorder %s1227_s1, %s770_s15  ;;  %p777_p9 = scmp.lt.u32.totalorder %s770_s15, %s1227_s1 }
  0x1a   : > { %p1039_p2 = pnand %p691_p1, %p1232_p4 }
  0x1c   : > { %p772_p3 = pneg %p1039_p2 }
  0x1e   : > { %p773_p7 = pnand %p772_p3, %p771_p0 }
  0x20   : > { %p774_p8 = pneg %p773_p7 }
  0x22   : > { %p779_p10 = pnand %p777_p9, %p774_p8 }
  0x24   : > { %782 = shalt.err (!%p779_p10)
}
  0x25   : > { %s783_s26 = scalar_lea.vmem %s176_s9, 512  ;;  %p791_p11 = scmp.lt.s32.totalorder %s176_s9, %s176_s9 }
  0x26   : > { %p784_p1 = scmp.ne.s32.totalorder %s176_s9, %s783_s26  ;;  %p792_p6 = scmp.lt.s32.totalorder %s783_s26, %s783_s26 }
  0x28   : > { %p786_p4 = pnand %p784_p1, %p772_p3  ;;  %p793_p13 = por %p792_p6, %p791_p11 }
  0x2a   : > { %p787_p12 = pneg %p786_p4 }
  0x2c   : > { %p794_p5 = pnand %p793_p13, %p787_p12 }
  0x2e   : > { %797 = shalt.err (!%p794_p5)
}
  0x2f   : > { %s928_s8 = smov 128   ;;  %s929_s11 = smov 8  }
  0x30   : > { %694 = dma.hbm_to_vmem [thread:$0]  (!%p1039_p2), %s1227_s1, 512, %s176_s9, [#allocation6], %s928_s8, %s928_s8, %s929_s11  }
  0x31   : > { %s798_s17 = scalar_lea.hbm %s1229_s3, 1024 }
  0x32   : > { %p799_p4 = scmp.ne.s32.totalorder %s1229_s3, %s798_s17  ;;  %p805_p11 = scmp.lt.u32.totalorder %s798_s17, %s1229_s3 }
  0x34   : > { %p801_p5 = pnand %p799_p4, %p772_p3 }
  0x36   : > { %p802_p6 = pneg %p801_p5 }
  0x38   : > { %p807_p12 = pnand %p805_p11, %p802_p6 }
  0x3a   : > { %810 = shalt.err (!%p807_p12)
}
  0x3b   : > { %s811_s9 = scalar_lea.vmem %s1043_s12, 1024  ;;  %p819_p8 = scmp.lt.s32.totalorder %s1043_s12, %s1043_s12 }
  0x3c   : > { %p812_p13 = scmp.ne.s32.totalorder %s1043_s12, %s811_s9  ;;  %p820_p9 = scmp.lt.s32.totalorder %s811_s9, %s811_s9 }
  0x3e   : > { %p814_p0 = pnand %p812_p13, %p772_p3  ;;  %p821_p10 = por %p820_p9, %p819_p8 }
  0x40   : > { %p815_p7 = pneg %p814_p0 }
  0x42   : > { %p822_p1 = pnand %p821_p10, %p815_p7 }
  0x44   : > { %825 = shalt.err (!%p822_p1)
}
  0x45   : > { %s930_s27 = smov 64   ;;  %s931_s8 = smov 4  }
  0x46   : > { %697 = dma.hbm_to_vmem [thread:$0]  (!%p1039_p2), %s1229_s3, 1024, %s1043_s12, [#allocation6], %s930_s27, %s930_s27, %s931_s8  }
  0x47   : > { %p614_p4 = scmp.ge.s32.totalorder %s924_s21, 2 }
  0x48   : > { %p1242_p3 = scmp.ne.s32.totalorder (!%p614_p4), %s1236_s28, 0 }
  0x49   : > { %204 = sbr.rel (%p614_p4) target bundleno = 115 (0x73), region = 32 }
  0x50   : > { %207 = sbr.rel (!%p1242_p3) target bundleno = 115 (0x73), region = 36  ;;  %s208_s14 = sand.u32 (%p1242_p3), 1, %s920_s20  }
  0x51   : > { %s616_s15 = sshll.u32 (%p1242_p3), %s924_s21, 1  ;;  %s615_s16 = sshll.u32 (%p1242_p3), %s208_s14, 4 }
  0x52   : > { %s214_s17 = ssub.s32 (%p1242_p3), 3, %s616_s15  ;;  %s1102_s23 = scalar_lea.sflag (%p1242_p3), [#allocation3], %s208_s14 }
  0x53   : > { %p215_p5 = scmp.lt.s32.totalorder (%p1242_p3), %s214_s17, 2  ;;  %s212_s25 = scalar_lea.vmem (%p1242_p3), [#allocation2], %s615_s16 }
  0x57   : > { %s1255_s17 = smov (!%p215_p5, %s214_s17), 2 }
  0x58   : > { %s1099_s10 = sshll.u32 %s1255_s17, 7 }
  0x59   : > { %s219_s12 = ssub.s32 256, %s1099_s10 }
  0x5a   : > { %220 = vsyncadd %s1102_s23, %s219_s12  ;;  %p618_p2 = scmp.ne.s32.totalorder %s1099_s10, 0  ;;  %s650_s28 = sshll.u32 %s924_s21, 8 }
  0x5b   : > { %s1110_s27 = scalar_lea.hbm %s1226_s0, %s650_s28  ;;  %s225_s8 = sshll.u32 %s212_s25, 4  ;;  %s1112_s8 = int_to_ptr.vmem [resolvable:$true] %s225_s8 }
  0x5c   : > { %s826_s11 = scalar_lea.hbm %s1110_s27, %s1099_s10  ;;  %s830_s15 = scalar_lea.hbm %s1226_s0, 384 }
  0x5d   : > { %p827_p6 = scmp.ne.s32.totalorder %s1110_s27, %s826_s11  ;;  %p831_p13 = scmp.lt.u32.totalorder %s1110_s27, %s1226_s0 }
  0x5e   : > { %p832_p0 = scmp.lt.u32.totalorder %s830_s15, %s826_s11  ;;  %p834_p8 = scmp.lt.u32.totalorder %s826_s11, %s1110_s27 }
  0x5f   : > { %p828_p11 = pnand %p827_p6, %p618_p2 }
  0x60   : > { %p833_p7 = por %p832_p0, %p831_p13 }
  0x61   : > { %p829_p12 = pneg %p828_p11 }
  0x62   : > { %p835_p9 = por %p834_p8, %p833_p7 }
  0x64   : > { %p836_p10 = pnand %p835_p9, %p829_p12 }
  0x66   : > { %839 = shalt.err (!%p836_p10)
}
  0x67   : > { %s840_s12 = scalar_lea.vmem %s1112_s8, %s1099_s10  ;;  %s932_s25 = smov [#allocation2]  }
  0x68   : > { %p841_p1 = scmp.ne.s32.totalorder %s1112_s8, %s840_s12  ;;  %s844_s28 = sshll.u32 %s932_s25, 4  ;;  %s845_s28 = int_to_ptr.vmem [resolvable:$false] %s844_s28 }
  0x69   : > { %s846_s26 = scalar_lea.vmem %s845_s28, 512  ;;  %p847_p6 = scmp.lt.s32.totalorder %s1112_s8, %s845_s28 }
  0x6a   : > { %p842_p3 = pnand %p841_p1, %p618_p2  ;;  %p848_p11 = scmp.lt.s32.totalorder %s846_s26, %s840_s12 }
  0x6c   : > { %p843_p5 = pneg %p842_p3  ;;  %p849_p13 = por %p848_p11, %p847_p6 }
  0x6e   : > { %p850_p0 = pnand %p849_p13, %p843_p5 }
  0x70   : > { %853 = shalt.err (!%p850_p0)
}
  0x71   : > { %s933_s9 = smov 128   ;;  %s934_s11 = smov 8  }
  0x72   : > { %231 = dma.hbm_to_vmem [thread:$0]  (%p618_p2), %s1110_s27, %s1099_s10, %s1112_s8, %s1102_s23, %s933_s9, %s933_s9, %s934_s11  }
  0x73 PF: > { %p1243_p12 = scmp.ne.s32.totalorder %s1240_s7, 0 }
  0x74   : > { %s1142_s13 = sand.u32 (!%p1243_p12), 1, %s916_s19   ;;  %p1244_p7 = scmp.ne.s32.totalorder (!%p1243_p12), %s1237_s29, 0 }
  0x75   : > { %237 = sbr.rel (%p1243_p12) target bundleno = 622 (0x26e), region = 40  ;;  %s623_s14 = sshll.u32 (!%p1243_p12), %s1142_s13, 4 }
  0x76   : > { %s240_s15 = scalar_lea.sflag (!%p1243_p12), [#allocation3], %s1142_s13  ;;  %s243_s16 = scalar_lea.vmem (!%p1243_p12), [#allocation2], %s623_s14 }
  0x7c   : > { %899 = dma.done.wait (%p1244_p7), %s240_s15, 256  }
  0x7d   : > { %901 = vsyncadd (%p1244_p7), %s240_s15, 4294967040  ;;  %p1245_p2 = scmp.eq.s32.totalorder %s992_s22, 0 }
  0x7f   : > { %903 = dma.done.wait (%p1245_p2), [#allocation6], 1536   ;;  %p1246_p8 = pmov %p1245_p2 }
  0x80   : > { %v935_v0 = vmov 0   ;;  %v936_v1 = vmov 0.0   ;;  %v752_v2 = vld [vmem:[#allocation5 + $0x4] ss:$8 sps:$4 sm:$0xff]   ;;  %v754_v3 = vld [vmem:[#allocation5] ss:$8 sps:$4 sm:$0xff]   ;;  %v299_v17 = vlaneseq }
  0x81   : > { %905 = vsyncadd (%p1246_p8), [#allocation6], 4294965760  ;;  %365 = vmatprep.mubr.bf16.mxu0 %v935_v0  ;;  %661 = vmatprep.subr.bf16.mxu1 %v936_v1  ;;  %v755_v4 = vld [vmem:[#allocation5 + $0x14] ss:$8 sps:$4 sm:$0xff]   ;;  %v757_v5 = vld [vmem:[#allocation5 + $0x10] ss:$8 sps:$4 sm:$0xff]  }
  0x82   : > { %333 = vmatprep.subr.bf16.mxu0 %v752_v2  ;;  %v290_v6 = vld [vmem:[%s243_s16] sm:$0xff]  ;;  %v291_v7 = vld [vmem:[%s243_s16 + $0x8] sm:$0xff]  ;;  %vm329_vm0 = vcmask 261120   ;;  %vm937_vm1 = vmmov 0   ;;  %v300_v18 = vshrl.u32 %v299_v17, 7  ;;  %s277_s27 = scalar_lea.vmem [#allocation8], %s623_s14 }
  0x83   : > { %334 = vmatpush1.bf16.msra.mxu0 %v754_v3  ;;  %v758_v8 = vld [vmem:[#allocation7] sm:$0xff]   ;;  %v292_v9 = vpack.c.bf16 %v291_v7, %v290_v6  ;;  %v759_v10 = vld [vmem:[#allocation7 + $0x8] sm:$0xff]   ;;  %v760_v11 = vld [vmem:[#allocation7 + $0x10] sm:$0xff]   ;;  %677 = vmatprep.mubr.msk.bf16.mxu1 %vm937_vm1, %v936_v1  ;;  %s499_s8 = scalar_lea.sflag [#allocation4], %s1142_s13  ;;  %p1247_p9 = scmp.ne.s32.totalorder %s1238_s30, 0 }
  0x84   : > { %335 = vmatprep.subr.bf16.mxu0 %v755_v4  ;;  %662 = vmatpush3.bf16.msra.mxu1 %v758_v8  ;;  %v761_v12 = vld [vmem:[#allocation7 + $0x18] sm:$0xff]   ;;  %v762_v13 = vld [vmem:[#allocation7 + $0x20] sm:$0xff]   ;;  %v763_v14 = vld [vmem:[#allocation7 + $0x28] sm:$0xff]   ;;  %v301_v19 = vsub.s32 0, %v300_v18  ;;  %v305_v21 = vsub.s32 1, %v300_v18  ;;  %s642_s17 = sshll.u32 (%p1247_p9), %s992_s22, 1 }
  0x85   : > { %663 = vmatprep.subr.bf16.mxu1 %v936_v1  ;;  %v764_v15 = vld [vmem:[#allocation7 + $0x30] sm:$0xff]   ;;  %v765_v16 = vld [vmem:[#allocation7 + $0x38] sm:$0xff]   ;;  %v297_v20 = vld [vmem:[%s1228_s2] sm:$0x3]  ;;  %s507_s12 = ssub.s32 (%p1247_p9), 3, %s642_s17 }
  0x86   : > { %v302_v22 = vrot.slane %v297_v20, %v301_v19  ;;  %v306_v24 = vrot.slane %v297_v20, %v305_v21  ;;  %v632_v40 = vld [vmem:[%s1230_s4] ss:$0 sm:$0xff]  ;;  %p508_p10 = scmp.lt.s32.totalorder (%p1247_p9), %s507_s12, 2 }
  0x87   : > { %336 = vmatpush1.bf16.msra.mxu0 %v757_v5 }
  0x88   : > { %664 = vmatpush3.bf16.msra.mxu1 %v759_v10 }
  0x89   : > { %665 = vmatprep.subr.bf16.mxu1 %v936_v1 }
  0x8a   : > { %631 = vmatmul.mubr.msk.bf16.vlgmr.msra.gmra.mrb[0].mxu0 %vm329_vm0, %v292_v9 }
  0x8c   : > { %666 = vmatpush3.bf16.msra.mxu1 %v760_v11 }
  0x8d   : > { %667 = vmatprep.subr.bf16.mxu1 %v936_v1 }
  0x90   : > { %668 = vmatpush3.bf16.msra.mxu1 %v761_v12 }
  0x91   : > { %669 = vmatprep.subr.bf16.mxu1 %v936_v1 }
  0x94   : > { %670 = vmatpush3.bf16.msra.mxu1 %v762_v13 }
  0x95   : > { %671 = vmatprep.subr.bf16.mxu1 %v936_v1 }
  0x98   : > { %672 = vmatpush3.bf16.msra.mxu1 %v763_v14 }
  0x99   : > { %673 = vmatprep.subr.bf16.mxu1 %v936_v1 }
  0x9c   : > { %674 = vmatpush3.bf16.msra.mxu1 %v764_v15 }
  0x9d   : > { %675 = vmatprep.subr.bf16.mxu1 %v936_v1 }
  0xa0   : > { %676 = vmatpush3.bf16.msra.mxu1 %v765_v16 }
 0x15d   : > { %v367_v23 = vpop.f32.mrb[0].mxu0 }
 0x15e   : > { %v369_v25 = vpop.f32.mrb[1].mxu0  ;;  %v368_v27 = vadd.f32 %v367_v23, %v302_v22 }
 0x15f   : > { %v371_v26 = vpop.f32.mrb[2].mxu0  ;;  %v370_v30 = vadd.f32 %v369_v25, %v306_v24 }
 0x160   : > { %v372_v28 = vadd.f32 %v371_v26, %v302_v22  ;;  %v373_v29 = vpop.f32.mrb[3].mxu0 }
 0x161   : > { %v374_v31 = vadd.f32 %v373_v29, %v306_v24 }
 0x162   : > { %v376_v32 = vpack.c.bf16 %v372_v28, %v368_v27 }
 0x163   : > { %v377_v33 = vpack.c.bf16 %v374_v31, %v370_v30 }
 0x165   : > { %v379_v34 = vmul.bf16 1056980736, %v377_v33 }
 0x167   : > { %766 = vtanh.bf16 %v379_v34 }
 0x168   : > { %768 = vtanh.bf16 %v376_v32 }
 0x172   : > { %v767_v35 = vpop.eup %766 }
 0x173   : > { %v381_v36 = vmul.bf16 1056980736, %v767_v35  ;;  %v769_v38 = vpop.eup %768 }
 0x175   : > { %v382_v37 = vadd.bf16 1056980736, %v381_v36 }
 0x177   : > { %v383_v39 = vmul.bf16 %v769_v38, %v382_v37 }
 0x179   : > { %678 = vmatmul.mubr.bf16.vlgmr.msra.gmra.mrb[0].mxu1 %v383_v39 }
 0x24b   : > { %505 = sbr.rel (!%p1247_p9) target bundleno = 622 (0x26e), region = 56 }
 0x24c   : > { %v489_v41 = vpop.f32.mrb[0].mxu1 }
 0x24d   : > { %v490_v42 = vadd.f32 %v632_v40, %v489_v41  ;;  %v679_v43 = vpop.f32.mrb[1].mxu1 }
 0x24e   : > { %v492_v44 = vpop.f32.mrb[2].mxu1 }
 0x24f   : > { %496 = vst [vmem:[%s277_s27] sm:$0xff] %v490_v42  ;;  %v493_v45 = vadd.f32 %v632_v40, %v492_v44  ;;  %v680_v46 = vpop.f32.mrb[3].mxu1 }
 0x251   : > { %497 = vst [vmem:[%s277_s27 + $0x8] sm:$0xff] %v493_v45 }
 0x252   : > { %s1257_s12 = smov (!%p508_p10, %s507_s12), 2 }
 0x253   : > { %s1168_s25 = sshll.u32 %s1257_s12, 7 }
 0x254   : > { %s512_s28 = ssub.s32 256, %s1168_s25 }
 0x255   : > { %513 = vsyncadd %s499_s8, %s512_s28  ;;  %p644_p1 = scmp.ne.s32.totalorder %s1168_s25, 0  ;;  %s651_s26 = sshll.u32 %s992_s22, 8 }
 0x256   : > { %s1178_s11 = scalar_lea.hbm %s1231_s5, %s651_s26  ;;  %s518_s14 = sshll.u32 %s277_s27, 4  ;;  %s1180_s14 = int_to_ptr.vmem [resolvable:$true] %s518_s14 }
 0x257   : > { %s854_s15 = scalar_lea.vmem %s1180_s14, %s1168_s25  ;;  %s938_s16 = smov [#allocation8]  }
 0x258   : > { %p855_p3 = scmp.ne.s32.totalorder %s1180_s14, %s854_s15  ;;  %s858_s29 = sshll.u32 %s938_s16, 4  ;;  %s859_s29 = int_to_ptr.vmem [resolvable:$false] %s858_s29 }
 0x259   : > { %s860_s22 = scalar_lea.vmem %s859_s29, 512  ;;  %p861_p11 = scmp.lt.s32.totalorder %s1180_s14, %s859_s29 }
 0x25a   : > { %p856_p5 = pnand %p855_p3, %p644_p1  ;;  %p862_p13 = scmp.lt.s32.totalorder %s860_s22, %s854_s15 }
 0x25c   : > { %p857_p6 = pneg %p856_p5  ;;  %p863_p0 = por %p862_p13, %p861_p11 }
 0x25e   : > { %p864_p12 = pnand %p863_p0, %p857_p6 }
 0x260   : > { %867 = shalt.err (!%p864_p12)
}
 0x261   : > { %s868_s7 = scalar_lea.hbm %s1178_s11, %s1168_s25  ;;  %s872_s27 = scalar_lea.hbm %s1231_s5, 384 }
 0x262   : > { %p869_p7 = scmp.ne.s32.totalorder %s1178_s11, %s868_s7  ;;  %p873_p9 = scmp.lt.u32.totalorder %s1178_s11, %s1231_s5 }
 0x263   : > { %p874_p10 = scmp.lt.u32.totalorder %s872_s27, %s868_s7  ;;  %p876_p5 = scmp.lt.u32.totalorder %s868_s7, %s1178_s11 }
 0x264   : > { %p870_p2 = pnand %p869_p7, %p644_p1 }
 0x265   : > { %p875_p3 = por %p874_p10, %p873_p9 }
 0x266   : > { %p871_p8 = pneg %p870_p2 }
 0x267   : > { %p877_p6 = por %p876_p5, %p875_p3 }
 0x269   : > { %p878_p11 = pnand %p877_p6, %p871_p8 }
 0x26b   : > { %881 = shalt.err (!%p878_p11)
}
 0x26c   : > { %s939_s28 = smov 128   ;;  %s940_s26 = smov 8  }
 0x26d   : > { %524 = dma.vmem_to_hbm [thread:$0]  (%p644_p1), %s1180_s14, %s1168_s25, %s1178_s11, %s499_s8, %s939_s28, %s939_s28, %s940_s26  }
 0x26e PF: > { %s533_s30 = sand.u32 1, %s912_s18   ;;  %p1248_p13 = scmp.ne.s32.totalorder %s1239_s6, 0 }
 0x26f   : > { %s534_s9 = scalar_lea.sflag [#allocation4], %s533_s30 }
 0x270   : > { %p699_p0 = pnand %p614_p4, %p1248_p13 }
 0x272   : > { %907 = dma.done.wait (!%p699_p0), %s534_s9, 256  }
 0x273   : > { %909 = vsyncadd (!%p699_p0), %s534_s9, 4294967040  ;;  %s1249_s15 = sld [smem:[#allocation12_spill]]  ;;  %p19_p12 = scmp.ge.s32.totalorder %s996_s24, 4  }
 0x274   : > { %s1250_s18 = smov %s916_s19  ;;  %s1251_s19 = smov %s920_s20 }
 0x275   : > { %s1253_s21 = smov %s996_s24  ;;  %21 = sbr.rel (!%p19_p12) target bundleno = 6 (0x6), region = 93 }
 0x279   : > { %s1252_s20 = smov %s1249_s15 }
 0x27c   :  { %539 = vsyncpa [#allocation3], 1 }
 0x27d   :  { %541 = vsyncpa [#allocation3 + $0x1], 1 }
 0x27e   :  { %542 = vsyncpa [#allocation6], 1 }
 0x27f   :  { %543 = vsyncpa [#allocation4], 1 }
 0x280   :  { %545 = vsyncpa [#allocation4 + $0x1], 1 }

// kernel: tpu_custom_call.1
= control target key start
LH: loop header
LB: loop body
LE: loop exit
PB: predicated region body
PF: predicated region fallthrough
CT: control target
= control target key end

     0   :  { %10 = vsyncpa [#allocation3], 0  ;;  %s1226_s0 = inlined_call_operand.hbm [shape: f32[24,32], index: 0, kind: input, shape index: {}]   ;;  %s1227_s1 = inlined_call_operand.hbm [shape: bf16[32,256], index: 1, kind: input, shape index: {}]   ;;  %s1228_s2 = inlined_call_operand.vmem [shape: f32[1,256], index: 2, kind: input, shape index: {}]   ;;  %s1229_s3 = inlined_call_operand.hbm [shape: bf16[128,128], index: 3, kind: input, shape index: {}]   ;;  %s1230_s4 = inlined_call_operand.vmem [shape: f32[1,128], index: 4, kind: input, shape index: {}]   ;;  %s1231_s5 = inlined_call_operand.hbm [shape: f32[24,128], index: 5, kind: output, shape index: {}]  }
   0x1   :  { %12 = vsyncpa [#allocation3 + $0x1], 0 }
   0x2   :  { %13 = vsyncpa [#allocation6], 0 }
   0x3   :  { %14 = vsyncpa [#allocation4], 0 }
   0x4   :  { %16 = vsyncpa [#allocation4 + $0x1], 0  ;;  %s971_s18 = smov 0   ;;  %s973_s19 = smov 0  }
   0x5   :  { %s975_s20 = smov 0   ;;  %s977_s21 = smov 0  }
   0x6 LB: > { %s992_s22 = sadd.s32 4294967295, %s924_s21   ;;  %s610_s23 = sadd.s32 4294967294, %s924_s21   ;;  %s924_s21 = sphi %s977_s21, %s1253_s21   ;;  %s920_s20 = sphi %s975_s20, %s1252_s20   ;;  %s916_s19 = sphi %s973_s19, %s1251_s19   ;;  %s912_s18 = sphi %s971_s18, %s1250_s18  }
   0x7   : > { %s996_s24 = sadd.s32 1, %s924_s21   ;;  %s29_s25 = sadd.s32 1, %s920_s20 }
   0x8   : > { %s26_s26 = ssub.s32 %s924_s21, %s996_s24  ;;  %p36_p0 = scmp.ne.s32.totalorder %s920_s20, %s916_s19 }
   0x9   : > { %p27_p1 = scmp.eq.s32.totalorder %s26_s26, 0  ;;  %p37_p2 = scmp.eq.s32.totalorder %s924_s21, 0 }
   0xa   : > { %p42_p3 = scmp.ne.s32.totalorder %s916_s19, %s912_s18  ;;  %p1232_p4 = scmp.eq.s32.totalorder %s992_s22, 0 }
   0xb   : > { %s1008_s27 = scalar_select %p27_p1, %s920_s20, %s29_s25  }
   0xc   : > { %p1010_p5 = por %p37_p2, %p36_p0  ;;  %p1016_p6 = por %p1232_p4, %p42_p3 }
   0xd   : > { %1235 = sst [smem:[#allocation12_spill]] %s1008_s27  ;;  %p150_p7 = scmp.eq.s32.totalorder %s992_s22, 1 }
   0xe   : > { %s1236_s28 = scalar_select %p1010_p5, 1, 0 }
   0xf   : > { %s1237_s29 = scalar_select %p1016_p6, 1, 0 }
  0x10   : > { %p156_p8 = scmp.eq.s32.totalorder %s610_s23, 1  ;;  %p611_p9 = scmp.ge.s32.totalorder %s924_s21, 1 }
  0x11   : > { %p163_p10 = scmp.lt.s32.totalorder %s924_s21, 3  ;;  %p1023_p11 = por %p150_p7, %p36_p0 }
  0x12   : > { %p1027_p12 = por %p156_p8, %p42_p3  ;;  %s926_s8 = smov [#allocation5]  }
  0x13   : > { %s1238_s30 = scalar_select %p1023_p11, 1, 0 }
  0x14   : > { %s1239_s6 = scalar_select %p1027_p12, 1, 0 }
  0x15   : > { %p1031_p13 = pnand %p611_p9, %p163_p10  ;;  %s175_s9 = sshll.u32 %s926_s8, 4  ;;  %s176_s9 = int_to_ptr.vmem [resolvable:$true] %s175_s9 }
  0x16   : > { %s927_s11 = smov [#allocation7]   ;;  %s770_s15 = scalar_lea.hbm %s1227_s1, 512 }
  0x17   : > { %s1240_s7 = scalar_select %p1031_p13, 1, 0 }
  0x18   : > { %p691_p1 = pneg %p1031_p13  ;;  %s191_s12 = sshll.u32 %s927_s11, 4  ;;  %s1043_s12 = int_to_ptr.vmem [resolvable:$true] %s191_s12 }
  0x19   : > { %p771_p0 = scmp.ne.s32.totalorder %s1227_s1, %s770_s15  ;;  %p777_p9 = scmp.lt.u32.totalorder %s770_s15, %s1227_s1 }
  0x1a   : > { %p1039_p2 = pnand %p691_p1, %p1232_p4 }
  0x1c   : > { %p772_p3 = pneg %p1039_p2 }
  0x1e   : > { %p773_p7 = pnand %p772_p3, %p771_p0 }
  0x20   : > { %p774_p8 = pneg %p773_p7 }
  0x22   : > { %p779_p10 = pnand %p777_p9, %p774_p8 }
  0x24   : > { %782 = shalt.err (!%p779_p10)
}
  0x25   : > { %s783_s26 = scalar_lea.vmem %s176_s9, 512  ;;  %p791_p11 = scmp.lt.s32.totalorder %s176_s9, %s176_s9 }
  0x26   : > { %p784_p1 = scmp.ne.s32.totalorder %s176_s9, %s783_s26  ;;  %p792_p6 = scmp.lt.s32.totalorder %s783_s26, %s783_s26 }
  0x28   : > { %p786_p4 = pnand %p784_p1, %p772_p3  ;;  %p793_p13 = por %p792_p6, %p791_p11 }
  0x2a   : > { %p787_p12 = pneg %p786_p4 }
  0x2c   : > { %p794_p5 = pnand %p793_p13, %p787_p12 }
  0x2e   : > { %797 = shalt.err (!%p794_p5)
}
  0x2f   : > { %s928_s8 = smov 128   ;;  %s929_s11 = smov 8  }
  0x30   : > { %694 = dma.hbm_to_vmem [thread:$0]  (!%p1039_p2), %s1227_s1, 512, %s176_s9, [#allocation6], %s928_s8, %s928_s8, %s929_s11  }
  0x31   : > { %s798_s17 = scalar_lea.hbm %s1229_s3, 1024 }
  0x32   : > { %p799_p4 = scmp.ne.s32.totalorder %s1229_s3, %s798_s17  ;;  %p805_p11 = scmp.lt.u32.totalorder %s798_s17, %s1229_s3 }
  0x34   : > { %p801_p5 = pnand %p799_p4, %p772_p3 }
  0x36   : > { %p802_p6 = pneg %p801_p5 }
  0x38   : > { %p807_p12 = pnand %p805_p11, %p802_p6 }
  0x3a   : > { %810 = shalt.err (!%p807_p12)
}
  0x3b   : > { %s811_s9 = scalar_lea.vmem %s1043_s12, 1024  ;;  %p819_p8 = scmp.lt.s32.totalorder %s1043_s12, %s1043_s12 }
  0x3c   : > { %p812_p13 = scmp.ne.s32.totalorder %s1043_s12, %s811_s9  ;;  %p820_p9 = scmp.lt.s32.totalorder %s811_s9, %s811_s9 }
  0x3e   : > { %p814_p0 = pnand %p812_p13, %p772_p3  ;;  %p821_p10 = por %p820_p9, %p819_p8 }
  0x40   : > { %p815_p7 = pneg %p814_p0 }
  0x42   : > { %p822_p1 = pnand %p821_p10, %p815_p7 }
  0x44   : > { %825 = shalt.err (!%p822_p1)
}
  0x45   : > { %s930_s27 = smov 64   ;;  %s931_s8 = smov 4  }
  0x46   : > { %697 = dma.hbm_to_vmem [thread:$0]  (!%p1039_p2), %s1229_s3, 1024, %s1043_s12, [#allocation6], %s930_s27, %s930_s27, %s931_s8  }
  0x47   : > { %p614_p4 = scmp.ge.s32.totalorder %s924_s21, 2 }
  0x48   : > { %p1242_p3 = scmp.ne.s32.totalorder (!%p614_p4), %s1236_s28, 0 }
  0x49   : > { %204 = sbr.rel (%p614_p4) target bundleno = 115 (0x73), region = 32 }
  0x50   : > { %207 = sbr.rel (!%p1242_p3) target bundleno = 115 (0x73), region = 36  ;;  %s208_s14 = sand.u32 (%p1242_p3), 1, %s920_s20  }
  0x51   : > { %s616_s15 = sshll.u32 (%p1242_p3), %s924_s21, 1  ;;  %s615_s16 = sshll.u32 (%p1242_p3), %s208_s14, 4 }
  0x52   : > { %s214_s17 = ssub.s32 (%p1242_p3), 3, %s616_s15  ;;  %s1102_s23 = scalar_lea.sflag (%p1242_p3), [#allocation3], %s208_s14 }
  0x53   : > { %p215_p5 = scmp.lt.s32.totalorder (%p1242_p3), %s214_s17, 2  ;;  %s212_s25 = scalar_lea.vmem (%p1242_p3), [#allocation2], %s615_s16 }
  0x57   : > { %s1255_s17 = smov (!%p215_p5, %s214_s17), 2 }
  0x58   : > { %s1099_s10 = sshll.u32 %s1255_s17, 7 }
  0x59   : > { %s219_s12 = ssub.s32 256, %s1099_s10 }
  0x5a   : > { %220 = vsyncadd %s1102_s23, %s219_s12  ;;  %p618_p2 = scmp.ne.s32.totalorder %s1099_s10, 0  ;;  %s650_s28 = sshll.u32 %s924_s21, 8 }
  0x5b   : > { %s1110_s27 = scalar_lea.hbm %s1226_s0, %s650_s28  ;;  %s225_s8 = sshll.u32 %s212_s25, 4  ;;  %s1112_s8 = int_to_ptr.vmem [resolvable:$true] %s225_s8 }
  0x5c   : > { %s826_s11 = scalar_lea.hbm %s1110_s27, %s1099_s10  ;;  %s830_s15 = scalar_lea.hbm %s1226_s0, 384 }
  0x5d   : > { %p827_p6 = scmp.ne.s32.totalorder %s1110_s27, %s826_s11  ;;  %p831_p13 = scmp.lt.u32.totalorder %s1110_s27, %s1226_s0 }
  0x5e   : > { %p832_p0 = scmp.lt.u32.totalorder %s830_s15, %s826_s11  ;;  %p834_p8 = scmp.lt.u32.totalorder %s826_s11, %s1110_s27 }
  0x5f   : > { %p828_p11 = pnand %p827_p6, %p618_p2 }
  0x60   : > { %p833_p7 = por %p832_p0, %p831_p13 }
  0x61   : > { %p829_p12 = pneg %p828_p11 }
  0x62   : > { %p835_p9 = por %p834_p8, %p833_p7 }
  0x64   : > { %p836_p10 = pnand %p835_p9, %p829_p12 }
  0x66   : > { %839 = shalt.err (!%p836_p10)
}
  0x67   : > { %s840_s12 = scalar_lea.vmem %s1112_s8, %s1099_s10  ;;  %s932_s25 = smov [#allocation2]  }
  0x68   : > { %p841_p1 = scmp.ne.s32.totalorder %s1112_s8, %s840_s12  ;;  %s844_s28 = sshll.u32 %s932_s25, 4  ;;  %s845_s28 = int_to_ptr.vmem [resolvable:$false] %s844_s28 }
  0x69   : > { %s846_s26 = scalar_lea.vmem %s845_s28, 512  ;;  %p847_p6 = scmp.lt.s32.totalorder %s1112_s8, %s845_s28 }
  0x6a   : > { %p842_p3 = pnand %p841_p1, %p618_p2  ;;  %p848_p11 = scmp.lt.s32.totalorder %s846_s26, %s840_s12 }
  0x6c   : > { %p843_p5 = pneg %p842_p3  ;;  %p849_p13 = por %p848_p11, %p847_p6 }
  0x6e   : > { %p850_p0 = pnand %p849_p13, %p843_p5 }
  0x70   : > { %853 = shalt.err (!%p850_p0)
}
  0x71   : > { %s933_s9 = smov 128   ;;  %s934_s11 = smov 8  }
  0x72   : > { %231 = dma.hbm_to_vmem [thread:$0]  (%p618_p2), %s1110_s27, %s1099_s10, %s1112_s8, %s1102_s23, %s933_s9, %s933_s9, %s934_s11  }
  0x73 PF: > { %p1243_p12 = scmp.ne.s32.totalorder %s1240_s7, 0 }
  0x74   : > { %s1142_s13 = sand.u32 (!%p1243_p12), 1, %s916_s19   ;;  %p1244_p7 = scmp.ne.s32.totalorder (!%p1243_p12), %s1237_s29, 0 }
  0x75   : > { %237 = sbr.rel (%p1243_p12) target bundleno = 622 (0x26e), region = 40  ;;  %s623_s14 = sshll.u32 (!%p1243_p12), %s1142_s13, 4 }
  0x76   : > { %s240_s15 = scalar_lea.sflag (!%p1243_p12), [#allocation3], %s1142_s13  ;;  %s243_s16 = scalar_lea.vmem (!%p1243_p12), [#allocation2], %s623_s14 }
  0x7c   : > { %899 = dma.done.wait (%p1244_p7), %s240_s15, 256  }
  0x7d   : > { %901 = vsyncadd (%p1244_p7), %s240_s15, 4294967040  ;;  %p1245_p2 = scmp.eq.s32.totalorder %s992_s22, 0 }
  0x7f   : > { %903 = dma.done.wait (%p1245_p2), [#allocation6], 1536   ;;  %p1246_p8 = pmov %p1245_p2 }
  0x80   : > { %v935_v0 = vmov 0   ;;  %v936_v1 = vmov 0.0   ;;  %v752_v2 = vld [vmem:[#allocation5 + $0x4] ss:$8 sps:$4 sm:$0xff]   ;;  %v754_v3 = vld [vmem:[#allocation5] ss:$8 sps:$4 sm:$0xff]   ;;  %v299_v17 = vlaneseq }
  0x81   : > { %905 = vsyncadd (%p1246_p8), [#allocation6], 4294965760  ;;  %365 = vmatprep.mubr.bf16.mxu0 %v935_v0  ;;  %661 = vmatprep.subr.bf16.mxu1 %v936_v1  ;;  %v755_v4 = vld [vmem:[#allocation5 + $0x14] ss:$8 sps:$4 sm:$0xff]   ;;  %v757_v5 = vld [vmem:[#allocation5 + $0x10] ss:$8 sps:$4 sm:$0xff]  }
  0x82   : > { %333 = vmatprep.subr.bf16.mxu0 %v752_v2  ;;  %v290_v6 = vld [vmem:[%s243_s16] sm:$0xff]  ;;  %v291_v7 = vld [vmem:[%s243_s16 + $0x8] sm:$0xff]  ;;  %vm329_vm0 = vcmask 261120   ;;  %vm937_vm1 = vmmov 0   ;;  %v300_v18 = vshrl.u32 %v299_v17, 7  ;;  %s277_s27 = scalar_lea.vmem [#allocation8], %s623_s14 }
  0x83   : > { %334 = vmatpush1.bf16.msra.mxu0 %v754_v3  ;;  %v758_v8 = vld [vmem:[#allocation7] sm:$0xff]   ;;  %v292_v9 = vpack.c.bf16 %v291_v7, %v290_v6  ;;  %v759_v10 = vld [vmem:[#allocation7 + $0x8] sm:$0xff]   ;;  %v760_v11 = vld [vmem:[#allocation7 + $0x10] sm:$0xff]   ;;  %677 = vmatprep.mubr.msk.bf16.mxu1 %vm937_vm1, %v936_v1  ;;  %s499_s8 = scalar_lea.sflag [#allocation4], %s1142_s13  ;;  %p1247_p9 = scmp.ne.s32.totalorder %s1238_s30, 0 }
  0x84   : > { %335 = vmatprep.subr.bf16.mxu0 %v755_v4  ;;  %662 = vmatpush3.bf16.msra.mxu1 %v758_v8  ;;  %v761_v12 = vld [vmem:[#allocation7 + $0x18] sm:$0xff]   ;;  %v762_v13 = vld [vmem:[#allocation7 + $0x20] sm:$0xff]   ;;  %v763_v14 = vld [vmem:[#allocation7 + $0x28] sm:$0xff]   ;;  %v301_v19 = vsub.s32 0, %v300_v18  ;;  %v305_v21 = vsub.s32 1, %v300_v18  ;;  %s642_s17 = sshll.u32 (%p1247_p9), %s992_s22, 1 }
  0x85   : > { %663 = vmatprep.subr.bf16.mxu1 %v936_v1  ;;  %v764_v15 = vld [vmem:[#allocation7 + $0x30] sm:$0xff]   ;;  %v765_v16 = vld [vmem:[#allocation7 + $0x38] sm:$0xff]   ;;  %v297_v20 = vld [vmem:[%s1228_s2] sm:$0x3]  ;;  %s507_s12 = ssub.s32 (%p1247_p9), 3, %s642_s17 }
  0x86   : > { %v302_v22 = vrot.slane %v297_v20, %v301_v19  ;;  %v306_v24 = vrot.slane %v297_v20, %v305_v21  ;;  %v632_v40 = vld [vmem:[%s1230_s4] ss:$0 sm:$0xff]  ;;  %p508_p10 = scmp.lt.s32.totalorder (%p1247_p9), %s507_s12, 2 }
  0x87   : > { %336 = vmatpush1.bf16.msra.mxu0 %v757_v5 }
  0x88   : > { %664 = vmatpush3.bf16.msra.mxu1 %v759_v10 }
  0x89   : > { %665 = vmatprep.subr.bf16.mxu1 %v936_v1 }
  0x8a   : > { %631 = vmatmul.mubr.msk.bf16.vlgmr.msra.gmra.mrb[0].mxu0 %vm329_vm0, %v292_v9 }
  0x8c   : > { %666 = vmatpush3.bf16.msra.mxu1 %v760_v11 }
  0x8d   : > { %667 = vmatprep.subr.bf16.mxu1 %v936_v1 }
  0x90   : > { %668 = vmatpush3.bf16.msra.mxu1 %v761_v12 }
  0x91   : > { %669 = vmatprep.subr.bf16.mxu1 %v936_v1 }
  0x94   : > { %670 = vmatpush3.bf16.msra.mxu1 %v762_v13 }
  0x95   : > { %671 = vmatprep.subr.bf16.mxu1 %v936_v1 }
  0x98   : > { %672 = vmatpush3.bf16.msra.mxu1 %v763_v14 }
  0x99   : > { %673 = vmatprep.subr.bf16.mxu1 %v936_v1 }
  0x9c   : > { %674 = vmatpush3.bf16.msra.mxu1 %v764_v15 }
  0x9d   : > { %675 = vmatprep.subr.bf16.mxu1 %v936_v1 }
  0xa0   : > { %676 = vmatpush3.bf16.msra.mxu1 %v765_v16 }
 0x15d   : > { %v367_v23 = vpop.f32.mrb[0].mxu0 }
 0x15e   : > { %v369_v25 = vpop.f32.mrb[1].mxu0  ;;  %v368_v27 = vadd.f32 %v367_v23, %v302_v22 }
 0x15f   : > { %v371_v26 = vpop.f32.mrb[2].mxu0  ;;  %v370_v30 = vadd.f32 %v369_v25, %v306_v24 }
 0x160   : > { %v372_v28 = vadd.f32 %v371_v26, %v302_v22  ;;  %v373_v29 = vpop.f32.mrb[3].mxu0 }
 0x161   : > { %v374_v31 = vadd.f32 %v373_v29, %v306_v24 }
 0x162   : > { %v376_v32 = vpack.c.bf16 %v372_v28, %v368_v27 }
 0x163   : > { %v377_v33 = vpack.c.bf16 %v374_v31, %v370_v30 }
 0x165   : > { %v379_v34 = vmul.bf16 1056980736, %v377_v33 }
 0x167   : > { %766 = vtanh.bf16 %v379_v34 }
 0x168   : > { %768 = vtanh.bf16 %v376_v32 }
 0x172   : > { %v767_v35 = vpop.eup %766 }
 0x173   : > { %v381_v36 = vmul.bf16 1056980736, %v767_v35  ;;  %v769_v38 = vpop.eup %768 }
 0x175   : > { %v382_v37 = vadd.bf16 1056980736, %v381_v36 }
 0x177   : > { %v383_v39 = vmul.bf16 %v769_v38, %v382_v37 }
 0x179   : > { %678 = vmatmul.mubr.bf16.vlgmr.msra.gmra.mrb[0].mxu1 %v383_v39 }
 0x24b   : > { %505 = sbr.rel (!%p1247_p9) target bundleno = 622 (0x26e), region = 56 }
 0x24c   : > { %v489_v41 = vpop.f32.mrb[0].mxu1 }
 0x24d   : > { %v490_v42 = vadd.f32 %v632_v40, %v489_v41  ;;  %v679_v43 = vpop.f32.mrb[1].mxu1 }
 0x24e   : > { %v492_v44 = vpop.f32.mrb[2].mxu1 }
 0x24f   : > { %496 = vst [vmem:[%s277_s27] sm:$0xff] %v490_v42  ;;  %v493_v45 = vadd.f32 %v632_v40, %v492_v44  ;;  %v680_v46 = vpop.f32.mrb[3].mxu1 }
 0x251   : > { %497 = vst [vmem:[%s277_s27 + $0x8] sm:$0xff] %v493_v45 }
 0x252   : > { %s1257_s12 = smov (!%p508_p10, %s507_s12), 2 }
 0x253   : > { %s1168_s25 = sshll.u32 %s1257_s12, 7 }
 0x254   : > { %s512_s28 = ssub.s32 256, %s1168_s25 }
 0x255   : > { %513 = vsyncadd %s499_s8, %s512_s28  ;;  %p644_p1 = scmp.ne.s32.totalorder %s1168_s25, 0  ;;  %s651_s26 = sshll.u32 %s992_s22, 8 }
 0x256   : > { %s1178_s11 = scalar_lea.hbm %s1231_s5, %s651_s26  ;;  %s518_s14 = sshll.u32 %s277_s27, 4  ;;  %s1180_s14 = int_to_ptr.vmem [resolvable:$true] %s518_s14 }
 0x257   : > { %s854_s15 = scalar_lea.vmem %s1180_s14, %s1168_s25  ;;  %s938_s16 = smov [#allocation8]  }
 0x258   : > { %p855_p3 = scmp.ne.s32.totalorder %s1180_s14, %s854_s15  ;;  %s858_s29 = sshll.u32 %s938_s16, 4  ;;  %s859_s29 = int_to_ptr.vmem [resolvable:$false] %s858_s29 }
 0x259   : > { %s860_s22 = scalar_lea.vmem %s859_s29, 512  ;;  %p861_p11 = scmp.lt.s32.totalorder %s1180_s14, %s859_s29 }
 0x25a   : > { %p856_p5 = pnand %p855_p3, %p644_p1  ;;  %p862_p13 = scmp.lt.s32.totalorder %s860_s22, %s854_s15 }
 0x25c   : > { %p857_p6 = pneg %p856_p5  ;;  %p863_p0 = por %p862_p13, %p861_p11 }
 0x25e   : > { %p864_p12 = pnand %p863_p0, %p857_p6 }
 0x260   : > { %867 = shalt.err (!%p864_p12)
}
 0x261   : > { %s868_s7 = scalar_lea.hbm %s1178_s11, %s1168_s25  ;;  %s872_s27 = scalar_lea.hbm %s1231_s5, 384 }
 0x262   : > { %p869_p7 = scmp.ne.s32.totalorder %s1178_s11, %s868_s7  ;;  %p873_p9 = scmp.lt.u32.totalorder %s1178_s11, %s1231_s5 }
 0x263   : > { %p874_p10 = scmp.lt.u32.totalorder %s872_s27, %s868_s7  ;;  %p876_p5 = scmp.lt.u32.totalorder %s868_s7, %s1178_s11 }
 0x264   : > { %p870_p2 = pnand %p869_p7, %p644_p1 }
 0x265   : > { %p875_p3 = por %p874_p10, %p873_p9 }
 0x266   : > { %p871_p8 = pneg %p870_p2 }
 0x267   : > { %p877_p6 = por %p876_p5, %p875_p3 }
 0x269   : > { %p878_p11 = pnand %p877_p6, %p871_p8 }
 0x26b   : > { %881 = shalt.err (!%p878_p11)
}
 0x26c   : > { %s939_s28 = smov 128   ;;  %s940_s26 = smov 8  }
 0x26d   : > { %524 = dma.vmem_to_hbm [thread:$0]  (%p644_p1), %s1180_s14, %s1168_s25, %s1178_s11, %s499_s8, %s939_s28, %s939_s28, %s940_s26  }
 0x26e PF: > { %s533_s30 = sand.u32 1, %s912_s18   ;;  %p1248_p13 = scmp.ne.s32.totalorder %s1239_s6, 0 }
 0x26f   : > { %s534_s9 = scalar_lea.sflag [#allocation4], %s533_s30 }
 0x270   : > { %p699_p0 = pnand %p614_p4, %p1248_p13 }
 0x272   : > { %907 = dma.done.wait (!%p699_p0), %s534_s9, 256  }
 0x273   : > { %909 = vsyncadd (!%p699_p0), %s534_s9, 4294967040  ;;  %s1249_s15 = sld [smem:[#allocation12_spill]]  ;;  %p19_p12 = scmp.ge.s32.totalorder %s996_s24, 4  }
 0x274   : > { %s1250_s18 = smov %s916_s19  ;;  %s1251_s19 = smov %s920_s20 }
 0x275   : > { %s1253_s21 = smov %s996_s24  ;;  %21 = sbr.rel (!%p19_p12) target bundleno = 6 (0x6), region = 93 }
 0x279   : > { %s1252_s20 = smov %s1249_s15 }
 0x27c   :  { %539 = vsyncpa [#allocation3], 1 }
 0x27d   :  { %541 = vsyncpa [#allocation3 + $0x1], 1 }
 0x27e   :  { %542 = vsyncpa [#allocation6], 1 }
 0x27f   :  { %543 = vsyncpa [#allocation4], 1 }
 0x280   :  { %545 = vsyncpa [#allocation4 + $0x1], 1 }

</bundles_post_ra>
